<compile_context>
chip_gen: v6e
topology: v6e:2x2x1
jax: 0.10.0
libtpu: 0.0.40
codegen_flags: <defaults>
</compile_context>

<pallas_src>
import functools

import jax
import jax.numpy as jnp
from jax.experimental import pallas as pl
from jax.experimental.pallas import tpu as pltpu

EPS = 1e-10

# Per-block byte budget (applies to the input block and the output block each).
# 6 MiB double-buffered for in + out = 24 MiB live, comfortably inside the
# 48 MiB scoped-VMEM limit below on every generation (v7x: 64 MiB physical).
MAX_BLOCK_BYTES = 6 * 1024 * 1024
VMEM_LIMIT_BYTES = 48 * 1024 * 1024


def _l2norm_kernel(x_ref, w_ref, o_ref):
    # x_ref: (BN, C, TILE_S) -- channels on sublanes, spatial positions on lanes
    # w_ref: (1,  C, 1)      -- per-channel scale (gamma), broadcast along lanes
    x = x_ref[...].astype(jnp.float32)
    ss = jnp.sum(x * x, axis=1, keepdims=True)       # (BN, 1, TILE_S) sublane reduce
    norm = jnp.sqrt(ss) + EPS                        # eps AFTER sqrt: matches PyTorch
    inv = 1.0 / norm                                 # exact reciprocal (bandwidth-bound)
    w = w_ref[...].astype(jnp.float32)               # (1, C, 1)
    scale = inv * w                                  # (BN, C, TILE_S) per-elem scale
    o_ref[...] = (x * scale).astype(o_ref.dtype)


@jax.jit
def l2norm(x_nchw, weight):
    """x_nchw: (N, C, H, W); weight: (C,). Returns (N, C, H, W)."""
    N, C, H, W = x_nchw.shape
    S = H * W

    # Free contiguous reshape: NCHW -> (N, C, S). No HBM transpose round trips.
    x = x_nchw.reshape(N, C, S)
    w = weight.reshape(1, C, 1)

    itemsize = jnp.dtype(x_nchw.dtype).itemsize
    s_pad = pl.cdiv(S, 128) * 128

    # Lane tile: driven by the byte budget alone (no artificial max_tile_s cap),
    # rounded to a multiple of 128, clipped to the (padded) spatial extent.
    # NOTE: for very large C the 128-lane floor can exceed the budget; that is
    # the minimum legal lane tile, and VMEM_LIMIT_BYTES still leaves headroom.
    lanes_cap = max(128, (MAX_BLOCK_BYTES // (C * itemsize)) // 128 * 128)
    tile_s = int(min(lanes_cap, s_pad))

    # Fold the batch axis into the block when it still fits the budget:
    # fewer grid steps in the small-C / small-S regime where per-step overhead
    # (~0.35 us) dominates.
    if N * C * tile_s * itemsize <= MAX_BLOCK_BYTES:
        block_n = N
    else:
        block_n = 1

    grid_s = pl.cdiv(S, tile_s)
    grid_n = pl.cdiv(N, block_n)

    # v7x megacore: ensure >=2 grid steps so both TensorCores get work
    # (harmless no-op on single-TC v5e/v6e).
    if grid_n * grid_s < 2:
        if s_pad >= 256:
            tile_s = pl.cdiv(s_pad // 128, 2) * 128
            grid_s = pl.cdiv(S, tile_s)
        elif N >= 2:
            block_n = 1
            grid_n = N

    out = pl.pallas_call(
        _l2norm_kernel,
        out_shape=jax.ShapeDtypeStruct((N, C, S), x_nchw.dtype),
        grid_spec=pltpu.PrefetchScalarGridSpec(
            num_scalar_prefetch=0,
            grid=(grid_n, grid_s),
            in_specs=[
                pl.BlockSpec((block_n, C, tile_s), lambda n, s: (n, 0, s)),
                # Tiny constant block; constant index_map => fetched once, reused.
                pl.BlockSpec((1, C, 1), lambda n, s: (0, 0, 0)),
            ],
            out_specs=pl.BlockSpec((block_n, C, tile_s), lambda n, s: (n, 0, s)),
        ),
        compiler_params=pltpu.CompilerParams(
            # Both axes independent -> shard across v7x's 2 TensorCores.
            dimension_semantics=("parallel", "parallel"),
            vmem_limit_bytes=VMEM_LIMIT_BYTES,
        ),
    )(x, w)

    # Free reshape back to NCHW.
    return out.reshape(N, C, H, W)


def l2norm_reference(x_nchw, weight):
    norm = jnp.sqrt(jnp.sum(x_nchw**2, axis=1, keepdims=True)) + EPS
    return x_nchw / norm * weight.reshape(1, -1, 1, 1)


if __name__ == "__main__":
    # Module config: n_channels=4, scale (gamma) = 20.0
    n_channels = 4
    gamma = 20.0

    key = jax.random.PRNGKey(0)
    x = jax.random.normal(key, (2, n_channels, 16, 16), dtype=jnp.float32)

    # Deterministic parameter init, mirroring init.constant_(weight, gamma)
    weight = jnp.full((n_channels,), gamma, dtype=jnp.float32)

    out = jax.block_until_ready(l2norm(x, weight))
    ref = l2norm_reference(x, weight)

    assert out.shape == x.shape and out.dtype == x.dtype
    # Exact reciprocal in the kernel => tight tolerances vs the reference.
    assert jnp.allclose(out, ref, atol=1e-6, rtol=1e-5), "mismatch vs reference"

    print("KERNEL_OK")
</pallas_src>

<mosaic_0001>
module attributes {stable_mosaic.version = 11 : i64} {
  func.func @_l2norm_kernel(%arg0: i32, %arg1: i32, %arg2: memref<2x4x128xf32, #tpu.memory_space<vmem>>, %arg3: memref<1x4x1xf32, #tpu.memory_space<vmem>>, %arg4: memref<2x4x128xf32, #tpu.memory_space<vmem>>) attributes {dimension_semantics = [#tpu.dimension_semantics<parallel>, #tpu.dimension_semantics<parallel>], iteration_bounds = array<i64: 1, 2>, scalar_prefetch = 0 : i64, scratch_operands = 0 : i64, tpu.core_type = #tpu.core_type<tc>, window_params = [{transform_indices = @transform_0, window_bounds = array<i64: 2, 4, 128>}, {pipeline_mode = #tpu.pipeline_mode<synchronous>, transform_indices = @transform_1, window_bounds = array<i64: 1, 4, 1>}, {transform_indices = @transform_2, window_bounds = array<i64: 2, 4, 128>}]} {
    %c0 = arith.constant 0 : index
    %c0_0 = arith.constant 0 : index
    %c0_1 = arith.constant 0 : index
    %0 = vector.load %arg2[%c0, %c0_0, %c0_1] : memref<2x4x128xf32, #tpu.memory_space<vmem>>, vector<2x4x128xf32>
    %1 = arith.mulf %0, %0 : vector<2x4x128xf32>
    %cst = arith.constant dense<0.000000e+00> : vector<2x128xf32>
    %2 = vector.multi_reduction <add>, %1, %cst [1] : vector<2x4x128xf32> to vector<2x128xf32>
    %3 = vector.shape_cast %2 : vector<2x128xf32> to vector<2x1x128xf32>
    %4 = math.sqrt %3 : vector<2x1x128xf32>
    %cst_2 = arith.constant 1.000000e-10 : f32
    %5 = vector.broadcast %cst_2 : f32 to vector<2x1x128xf32>
    %6 = arith.addf %4, %5 : vector<2x1x128xf32>
    %cst_3 = arith.constant 1.000000e+00 : f32
    %7 = vector.broadcast %cst_3 : f32 to vector<2x1x128xf32>
    %8 = arith.divf %7, %6 : vector<2x1x128xf32>
    %c0_4 = arith.constant 0 : index
    %c0_5 = arith.constant 0 : index
    %c0_6 = arith.constant 0 : index
    %9 = vector.load %arg3[%c0_4, %c0_5, %c0_6] : memref<1x4x1xf32, #tpu.memory_space<vmem>>, vector<1x4x1xf32>
    %10 = vector.broadcast %8 : vector<2x1x128xf32> to vector<2x4x128xf32>
    %11 = vector.broadcast %9 : vector<1x4x1xf32> to vector<2x4x128xf32>
    %12 = arith.mulf %10, %11 : vector<2x4x128xf32>
    %13 = arith.mulf %0, %12 : vector<2x4x128xf32>
    %c0_7 = arith.constant 0 : index
    %c0_8 = arith.constant 0 : index
    %c0_9 = arith.constant 0 : index
    %14 = vector.load %arg4[%c0_7, %c0_8, %c0_9] : memref<2x4x128xf32, #tpu.memory_space<vmem>>, vector<2x4x128xf32>
    tpu.vector_store %arg4[%c0_7, %c0_8, %c0_9], %13 {strides = array<i32>} : memref<2x4x128xf32, #tpu.memory_space<vmem>>, vector<2x4x128xf32>,
    return
  }
  func.func @transform_0(%arg0: i32, %arg1: i32) -> (i32, i32, i32) {
    %c0_i32 = arith.constant 0 : i32
    %c0_i32_0 = arith.constant 0 : i32
    return %arg0, %c0_i32, %arg1 : i32, i32, i32
  }
  func.func @transform_1(%arg0: i32, %arg1: i32) -> (i32, i32, i32) {
    %c0_i32 = arith.constant 0 : i32
    %c0_i32_0 = arith.constant 0 : i32
    %c0_i32_1 = arith.constant 0 : i32
    %c0_i32_2 = arith.constant 0 : i32
    return %c0_i32, %c0_i32_0, %c0_i32_1 : i32, i32, i32
  }
  func.func @transform_2(%arg0: i32, %arg1: i32) -> (i32, i32, i32) {
    %c0_i32 = arith.constant 0 : i32
    %c0_i32_0 = arith.constant 0 : i32
    return %arg0, %c0_i32, %arg1 : i32, i32, i32
  }
}

</mosaic_0001>

<bundles_post_ra>
// kernel: l2norm.1
= control target key start
LH: loop header
LB: loop body
LE: loop exit
PB: predicated region body
PF: predicated region fallthrough
CT: control target
= control target key end

     0   :  { %s502_s9 = smov 0   ;;  %s504_s10 = smov 0   ;;  %s581_s0 = inlined_call_operand.vmem [shape: f32[2,4,256], index: 0, kind: input, shape index: {}]   ;;  %s582_s1 = inlined_call_operand.vmem [shape: f32[1,4,1], index: 1, kind: input, shape index: {}]   ;;  %s583_s2 = inlined_call_operand.vmem [shape: f32[2,4,256], index: 2, kind: output, shape index: {}]  }
   0x1   :  { %s506_s11 = smov 0   ;;  %s508_s12 = smov 0  }
   0x2   :  { %s510_s13 = smov 0  }
   0x3 LB: > { %s21_s14 = sadd.s32 1, %s480_s12  ;;  %s383_s15 = sadd.s32 4294967295, %s484_s13   ;;  %s484_s13 = sphi %s510_s13, %s12_s13   ;;  %s480_s12 = sphi %s508_s12, %s588_s12   ;;  %s476_s11 = sphi %s506_s11, %s587_s11   ;;  %s472_s10 = sphi %s504_s10, %s586_s10   ;;  %s468_s9 = sphi %s502_s9, %s585_s9  }
   0x4   : > { %p22_p0 = scmp.ge.s32.totalorder %s21_s14, 2  ;;  %p40_p1 = scmp.ne.s32.totalorder %s472_s10, %s468_s9 }
   0x5   : > { %p41_p2 = scmp.eq.s32.totalorder %s484_s13, 0  ;;  %p93_p4 = scmp.eq.s32.totalorder %s383_s15, 1 }
   0x6   : > { %s590_s14 = smov (%p22_p0, %s21_s14), 0  ;;  %s33_s17 = sadd.s32 1, %s472_s10 }
   0x7   : > { %p42_p3 = por %p41_p2, %p40_p1  ;;  %s29_s16 = ssub.s32 %s480_s12, %s590_s14 }
   0x8   : > { %p31_p5 = scmp.eq.s32.totalorder %s29_s16, 0  ;;  %p537_p6 = por %p93_p4, %p40_p1 }
   0x9   : > { %p386_p7 = scmp.ge.s32.totalorder %s484_s13, 2 }
   0xa   : > { %s542_s19 = scalar_select %p31_p5, %s472_s10, %s33_s17  }
   0xb   : > { %118 = sbr.rel (%p386_p7) target bundleno = 21 (0x15), region = 20 }
  0x10   : > { %121 = sbr.rel (!%p42_p3) target bundleno = 21 (0x15), region = 24  ;;  %s123_s20 = sand.u32 (%p42_p3), 1, %s472_s10  }
  0x11   : > { %s388_s21 = sshll.u32 (%p42_p3), %s480_s12, 2  ;;  %s387_s22 = sshll.u32 (%p42_p3), %s123_s20, 3 }
  0x12   : > { %s130_s25 = scalar_lea.vmem (%p42_p3), %s581_s0, %s388_s21  ;;  %s125_s26 = scalar_lea.vmem (%p42_p3), [#allocation2], %s387_s22 }
  0x13   : > { %v147_v0 = vld [vmem:[%s130_s25] sm:$0xf] (%p42_p3)  ;;  %v149_v1 = vld [vmem:[%s130_s25 + $0x8] sm:$0xf] (%p42_p3) }
  0x14   : > { %148 = vst [vmem:[%s125_s26] sm:$0xf] (%p42_p3), %v147_v0  ;;  %150 = vst [vmem:[%s125_s26 + $0x4] sm:$0xf] (%p42_p3), %v149_v1 }
  0x15 PF: > { %p389_p8 = scmp.ge.s32.totalorder %s484_s13, 1  ;;  %p177_p9 = scmp.lt.s32.totalorder %s484_s13, 3 }
  0x17   : > { %p178_p10 = pnand %p389_p8, %p177_p9 }
  0x18   : > { %s184_s29 = sand.u32 (!%p178_p10), 1, %s468_s9  }
  0x19   : > { %181 = sbr.rel (%p178_p10) target bundleno = 169 (0xa9), region = 65  ;;  %s556_s30 = sshll.u32 (!%p178_p10), %s184_s29, 3 }
  0x1a   : > { %s186_s3 = scalar_lea.vmem (!%p178_p10), [#allocation2], %s556_s30  ;;  %s203_s4 = scalar_lea.vmem (!%p178_p10), [#allocation3], %s556_s30 }
  0x1e   : > { %v245_v2 = vld [vmem:[%s582_s1] sm:$0xf]  ;;  %v486_v3 = vmov 0   ;;  %v207_v5 = vld [vmem:[%s186_s3 + $0x4] sm:$0xf]  ;;  %vm210_vm0 = vcmask 1043456  }
  0x1f   : > { %437 = vset.pattern.permute.xlu0 %v486_v3  ;;  %v206_v4 = vld [vmem:[%s186_s3] sm:$0xf]  ;;  %v209_v7 = vmul.f32 %v207_v5, %v207_v5  ;;  %s393_s5 = sshll.u32 (%p537_p6), %s476_s11, 2 }
  0x20   : > { %248 = vperm.xlu0 %437, %v245_v2   ;;  %v208_v6 = vmul.f32 %v206_v4, %v206_v4  ;;  %s268_s8 = scalar_lea.vmem (%p537_p6), %s583_s2, %s393_s5 }
  0x21   : > { %v218_v9 = vsel %vm210_vm0, %v209_v7, 0.0 }
  0x22   : > { %v211_v8 = vsel %vm210_vm0, %v208_v6, 0.0  ;;  %v219_v11 = vrot.slane %v218_v9, 4 }
  0x23   : > { %v212_v10 = vrot.slane %v211_v8, 4 }
  0x24   : > { %v220_v13 = vadd.f32 %v219_v11, %v218_v9 }
  0x25   : > { %v213_v12 = vadd.f32 %v212_v10, %v211_v8 }
  0x26   : > { %v221_v15 = vrot.slane %v220_v13, 2 }
  0x27   : > { %v214_v14 = vrot.slane %v213_v12, 2 }
  0x28   : > { %v222_v17 = vadd.f32 %v221_v15, %v220_v13 }
  0x29   : > { %v215_v16 = vadd.f32 %v214_v14, %v213_v12 }
  0x2a   : > { %v223_v19 = vrot.slane %v222_v17, 1 }
  0x2b   : > { %v216_v18 = vrot.slane %v215_v16, 1 }
  0x2c   : > { %v224_v21 = vadd.f32 %v223_v19, %v222_v17 }
  0x2d   : > { %v217_v20 = vadd.f32 %v216_v18, %v215_v16 }
  0x2e   : > { %vm234_vm2 = vcmp.eq.f32.partialorder %v224_v21, inf  ;;  %v237_v28 = vand.u32 2147483648, %v224_v21  ;;  %vm236_vm4 = vcmp.eq.f32.partialorder %v224_v21, 0.0 }
  0x2f   : > { %438 = vrsqrt.f32 %v217_v20  ;;  %vm227_vm1 = vcmp.eq.f32.partialorder %v217_v20, inf  ;;  %v230_v26 = vand.u32 2147483648, %v217_v20  ;;  %vm229_vm3 = vcmp.eq.f32.partialorder %v217_v20, 0.0 }
  0x30   : > { %440 = vrsqrt.f32 %v224_v21 }
  0x3c   : > { %v439_v22 = vpop.eup %438 }
  0x3d   : > { %v441_v23 = vpop.eup %440  ;;  %v226_v24 = vmul.f32 %v439_v22, %v217_v20 }
  0x3e   : > { %v233_v25 = vmul.f32 %v441_v23, %v224_v21 }
  0x3f   : > { %v228_v27 = vsel %vm227_vm1, %v217_v20, %v226_v24 }
  0x40   : > { %v235_v29 = vsel %vm234_vm2, %v224_v21, %v233_v25  ;;  %v231_v30 = vsel %vm229_vm3, %v230_v26, %v228_v27 }
  0x41   : > { %v238_v31 = vsel %vm236_vm4, %v237_v28, %v235_v29  ;;  %v239_v32 = vadd.f32 1e-10, %v231_v30 }
  0x42   : > { %v240_v33 = vadd.f32 1e-10, %v238_v31 }
  0x43   : > { %442 = vrcp.f32 %v239_v32 }
  0x44   : > { %444 = vrcp.f32 %v240_v33 }
  0x50   : > { %v443_v34 = vpop.eup %442 }
  0x51   : > { %v445_v35 = vpop.eup %444 }
  0x9b   : > { %v249_v36 = vpop.permute.xlu0 %248 }
  0x9c   : > { %v251_v37 = vmul.f32 %v443_v34, %v249_v36  ;;  %v252_v38 = vmul.f32 %v445_v35, %v249_v36  ;;  %263 = sbr.rel (!%p537_p6) target bundleno = 169 (0xa9), region = 73 }
  0x9e   : > { %v253_v39 = vmul.f32 %v251_v37, %v206_v4  ;;  %v254_v40 = vmul.f32 %v252_v38, %v207_v5 }
  0xa0   : > { %255 = vst [vmem:[%s203_s4] sm:$0xf] %v253_v39  ;;  %256 = vst [vmem:[%s203_s4 + $0x4] sm:$0xf] %v254_v40 }
  0xa7   : > { %v285_v41 = vld [vmem:[%s203_s4] sm:$0xf]  ;;  %v287_v42 = vld [vmem:[%s203_s4 + $0x4] sm:$0xf] }
  0xa8   : > { %286 = vst [vmem:[%s268_s8] sm:$0xf] %v285_v41  ;;  %288 = vst [vmem:[%s268_s8 + $0x8] sm:$0xf] %v287_v42 }
  0xa9 PF: > { %s12_s13 = sadd.s32 1, %s484_s13   ;;  %s585_s9 = smov %s472_s10 }
  0xaa   : > { %p9_p11 = scmp.ge.s32.totalorder %s12_s13, 4   ;;  %s586_s10 = smov %s542_s19 }
  0xab   : > { %s587_s11 = smov %s480_s12  ;;  %s588_s12 = smov %s590_s14 }
  0xac   :  { %11 = sbr.rel (!%p9_p11) target bundleno = 3 (0x3), region = 145 }

</bundles_post_ra>
